<compile_context>
chip_gen: v6e
topology: v6e:2x2x1
jax: 0.10.0
libtpu: 0.0.40
codegen_flags: <defaults>
</compile_context>

<pallas_src>
import jax
import jax.numpy as jnp
from jax.experimental import pallas as pl
from jax.experimental.pallas import tpu as pltpu


def _round_up(n, m):
    return ((n + m - 1) // m) * m


def _cdiv(a, b):
    return (a + b - 1) // b


# ------------------------------ Pallas kernel ------------------------------ #
def vae_kernel(
    x_ref, eps_ref,          # (TB, IN) caller dtype, (TB, Lp) f32
    w1_ref, b1_ref,          # (IN, H) compute dtype, (1, H) f32
    wh_ref, bh_ref,          # fused latent heads (H, 2*Lp) compute dtype, (1, 2*Lp) f32
    wd_ref, bd_ref,          # pre-masked decoder (Lp, IN) compute dtype, (1, IN) f32
    recons_ref, zstats_ref,  # (TB, IN) out dtype, (TB, 2*Lp) f32
):
    lp = eps_ref.shape[-1]
    cdt = w1_ref.dtype

    # Encoder hidden: relu(x @ W1 + b1).  x is cast to the matmul operand dtype on the
    # VPU (no wrapper copy); MXU accumulates in f32; bias add + relu stay in f32.
    h = jnp.dot(x_ref[...].astype(cdt), w1_ref[...],
                preferred_element_type=jnp.float32)
    h = jnp.maximum(h + b1_ref[...], 0.0)

    # Fused latent heads: [z_mean || z_log_var] in one MXU matmul, lane-padded to Lp.
    zstats = jnp.dot(h.astype(cdt), wh_ref[...],
                     preferred_element_type=jnp.float32) + bh_ref[...]
    z_mean = zstats[:, :lp]            # lane-aligned slices (lp is a multiple of 128)
    z_log_var = zstats[:, lp:]

    # Reparameterization trick (f32 elementwise; exp goes to the EUP).
    z = z_mean + jnp.exp(0.5 * z_log_var) * eps_ref[...]

    # Masked linear decoder (mask was pre-applied to the weight in prepare_vae_params).
    recons = jnp.dot(z.astype(cdt), wd_ref[...],
                     preferred_element_type=jnp.float32) + bd_ref[...]

    recons_ref[...] = recons.astype(recons_ref.dtype)
    zstats_ref[...] = zstats.astype(zstats_ref.dtype)


# ----------------------- One-time parameter preparation --------------------- #
def prepare_vae_params(params, compute_dtype=jnp.bfloat16, latent_lane_pad=128):
    """Transpose, mask, fuse and lane-pad the weights ONCE (cache the result).

    Keeps the per-call forward free of HBM transposes and in-kernel masking.
    PyTorch nn.Linear layout (out, in) is converted to matmul-ready (in, out).
    """
    w1 = jnp.asarray(params["w1"], jnp.float32)           # (H, IN)
    b1 = jnp.asarray(params["b1"], jnp.float32)           # (H,)
    wm = jnp.asarray(params["wm"], jnp.float32)           # (L, H)
    bm = jnp.asarray(params["bm"], jnp.float32)           # (L,)
    wv = jnp.asarray(params["wv"], jnp.float32)           # (L, H)
    bv = jnp.asarray(params["bv"], jnp.float32)           # (L,)
    wdec = jnp.asarray(params["wdec"], jnp.float32)       # (IN, L)
    bdec = jnp.asarray(params["bdec"], jnp.float32)       # (IN,)
    mask = jnp.asarray(params["mask_full"], jnp.float32)  # (IN, L)

    H, IN = w1.shape
    L = wm.shape[0]
    Lp = _round_up(L, latent_lane_pad)                    # lane-dense latent width

    # Encoder layer, matmul-ready (IN, H).
    w1_t = w1.T.astype(compute_dtype)
    b1_r = b1.reshape(1, H)

    # Fused + zero-padded latent heads: cols [0:Lp)=mean head, [Lp:2Lp)=logvar head.
    wh = jnp.zeros((H, 2 * Lp), jnp.float32)
    wh = wh.at[:, :L].set(wm.T).at[:, Lp:Lp + L].set(wv.T)
    bh = jnp.zeros((1, 2 * Lp), jnp.float32)
    bh = bh.at[0, :L].set(bm).at[0, Lp:Lp + L].set(bv)

    # Decoder: mask applied once, transposed, zero-padded to (Lp, IN) so padded latent
    # columns contribute nothing.
    wd = jnp.zeros((Lp, IN), jnp.float32)
    wd = wd.at[:L, :].set((wdec * mask).T)
    bd = bdec.reshape(1, IN)

    return {
        "w1_t": w1_t, "b1": b1_r,
        "wh": wh.astype(compute_dtype), "bh": bh,
        "wd": wd.astype(compute_dtype), "bd": bd,
        "H": H, "IN": IN, "L": L, "Lp": Lp,
        "compute_dtype": compute_dtype,
    }


# ------------------------------ Forward wrapper ------------------------------ #
def vae_forward(x, eps, p, *, tile_b=None, out_dtype=None, learn_kinetics=False):
    # TODO(synk): KineticsDecoder path (learn_kinetics=True) not implemented.
    assert not learn_kinetics
    IN, H, L, Lp = p["IN"], p["H"], p["L"], p["Lp"]
    cdt = jnp.dtype(p["compute_dtype"])
    itemsize = cdt.itemsize
    out_dtype = jnp.dtype(x.dtype if out_dtype is None else out_dtype)
    B = x.shape[0]

    # Batch tile: 256 rows for bf16 operands, 128 for f32; alignment matches sublane
    # packing (16 bf16 / 8 f32).
    align = 16 if itemsize == 2 else 8
    if tile_b is None:
        tile_b = 256 if itemsize == 2 else 128
    tb = min(tile_b, _round_up(B, align))
    # Give the "parallel" batch axis >=2 grid steps whenever B permits so both v7x
    # TensorCores get work (harmless on single-TC v5e/v6e).
    if _round_up(B, tb) // tb < 2 and B > align:
        tb = max(align, _round_up(_cdiv(B, 2), align))
    Bp = _round_up(B, tb)

    # x goes in untouched (the kernel casts it) unless batch padding is required.
    x_in = x if Bp == B else jnp.pad(x, ((0, Bp - B), (0, 0)))
    # eps is lane-padded to Lp with zeros (so padded latent columns stay exactly zero
    # through the zero-padded heads / decoder rows).
    eps_in = jnp.zeros((Bp, Lp), jnp.float32).at[:B, :L].set(eps.astype(jnp.float32))
    # TODO(synk): optional in-kernel eps via pltpu.prng_* would remove this input
    # entirely but changes the RNG stream vs. the PyTorch reference.

    grid = (Bp // tb,)
    batch_spec = lambda shape: pl.BlockSpec(shape, lambda i: (i, 0))
    # Weights never change across grid steps: single-buffer them (the second buffer of
    # the default pipeline would be dead VMEM and doubles the dominant VMEM term).
    const_spec = lambda shape: pl.BlockSpec(shape, lambda i: (0, 0),
                                            pipeline_mode=pl.Buffered(1))

    out_shapes = (
        jax.ShapeDtypeStruct((Bp, IN), out_dtype),        # recons
        jax.ShapeDtypeStruct((Bp, 2 * Lp), jnp.float32),  # [z_mean || z_log_var]
    )

    # VMEM budget: single-buffered weights + double-buffered activation tiles, capped
    # to the chip's physical VMEM minus headroom (64 MiB on v7x, 128 MiB v5e/v6e).
    weight_bytes = ((p["w1_t"].size + p["wh"].size + p["wd"].size) * itemsize
                    + (p["b1"].size + p["bh"].size + p["bd"].size) * 4)
    act_bytes = (tb * IN * jnp.dtype(x.dtype).itemsize    # x block
                 + tb * Lp * 4                            # eps block
                 + tb * IN * out_dtype.itemsize           # recons block
                 + tb * 2 * Lp * 4)                       # zstats block
    try:
        vmem_cap = int(getattr(pltpu.get_tpu_info(), "vmem_capacity_bytes", 64 << 20))
    except Exception:  # pragma: no cover - conservative fallback
        vmem_cap = 64 << 20
    vmem_limit = int(min(vmem_cap - (4 << 20),
                         max(16 << 20, weight_bytes + 2 * act_bytes + (4 << 20))))
    # TODO(synk): for production gene counts (IN in the tens of thousands) the weights
    # no longer fit VMEM-resident; stream W1 over a K-reduction grid axis and tile the
    # decoder / recons over IN output columns instead.

    flops = 2 * Bp * (IN * H + H * 2 * Lp + Lp * IN)
    bytes_accessed = int(weight_bytes
                         + Bp * IN * jnp.dtype(x.dtype).itemsize
                         + Bp * Lp * 4
                         + Bp * IN * out_dtype.itemsize
                         + Bp * 2 * Lp * 4)

    recons, zstats = pl.pallas_call(
        vae_kernel,
        grid=grid,
        in_specs=[
            batch_spec((tb, IN)),         # x
            batch_spec((tb, Lp)),         # eps
            const_spec((IN, H)),          # w1_t
            const_spec((1, H)),           # b1
            const_spec((H, 2 * Lp)),      # fused latent heads
            const_spec((1, 2 * Lp)),      # fused head bias
            const_spec((Lp, IN)),         # pre-masked decoder weight
            const_spec((1, IN)),          # decoder bias
        ],
        out_specs=(batch_spec((tb, IN)), batch_spec((tb, 2 * Lp))),
        out_shape=out_shapes,
        compiler_params=pltpu.CompilerParams(
            dimension_semantics=("parallel",),
            vmem_limit_bytes=vmem_limit,
        ),
        cost_estimate=pl.CostEstimate(
            flops=flops, transcendentals=Bp * Lp, bytes_accessed=bytes_accessed),
    )(x_in, eps_in, p["w1_t"], p["b1"], p["wh"], p["bh"], p["wd"], p["bd"])

    # learn_kinetics=False branch of the PyTorch module: kinetics outputs are 0.
    return {
        "prediction": 0,
        "recons": recons[:B],
        "z_mean": zstats[:B, :L],
        "z_log_var": zstats[:B, Lp:Lp + L],
        "pp": 0, "nn": 0, "pn": 0, "np": 0,
    }


# ------------------------------ Reference (pure JAX) ------------------------ #
def vae_forward_ref(x, eps, params):
    hp = jax.lax.Precision.HIGHEST
    h = jnp.maximum(jnp.dot(x, params["w1"].T, precision=hp) + params["b1"], 0.0)
    z_mean = jnp.dot(h, params["wm"].T, precision=hp) + params["bm"]
    z_log_var = jnp.dot(h, params["wv"].T, precision=hp) + params["bv"]
    z = z_mean + jnp.exp(0.5 * z_log_var) * eps
    recons = (jnp.dot(z, (params["wdec"] * params["mask_full"]).T, precision=hp)
              + params["bdec"])
    return recons, z_mean, z_log_var


# ------------------------------ Main ---------------------------------------- #
if __name__ == "__main__":
    key = jax.random.PRNGKey(0)
    ks = jax.random.split(key, 12)

    B = 8          # batch
    G = 64         # n_genes (adata.shape[1])
    IN = 2 * G     # input_dim = n_genes * 2 (unspliced || spliced)
    H = 128        # hidden_dim (small stand-in for 512)
    L = 8          # latent_dim = mask.shape[1]

    # Deterministic synthetic parameters (PyTorch nn.Linear layout: (out, in)).
    scale = 0.05
    mask_genes = (jax.random.uniform(ks[0], (G, L)) > 0.5).astype(jnp.float32)
    params = {
        "w1": scale * jax.random.normal(ks[1], (H, IN), jnp.float32),
        "b1": scale * jax.random.normal(ks[2], (H,), jnp.float32),
        "wm": scale * jax.random.normal(ks[3], (L, H), jnp.float32),
        "bm": scale * jax.random.normal(ks[4], (L,), jnp.float32),
        "wv": scale * jax.random.normal(ks[5], (L, H), jnp.float32),
        "bv": scale * jax.random.normal(ks[6], (L,), jnp.float32),
        "wdec": scale * jax.random.normal(ks[7], (IN, L), jnp.float32),
        "bdec": scale * jax.random.normal(ks[8], (IN,), jnp.float32),
        # mask is (n_genes, latent); tiled to cover (unspliced || spliced) rows.
        "mask_full": jnp.tile(mask_genes, (2, 1)),   # (IN, L)
    }

    x = jax.random.normal(ks[9], (B, IN), jnp.float32)
    eps = jax.random.normal(ks[10], (B, L), jnp.float32)   # reparameterization noise

    r_ref, zm_ref, zv_ref = vae_forward_ref(x, eps, params)

    # f32 matmul path (multi-pass MXU, near-exact) — tight tolerance.
    prepped_f32 = prepare_vae_params(params, compute_dtype=jnp.float32)
    fwd_f32 = jax.jit(lambda xx, ee: vae_forward(xx, ee, prepped_f32))
    out = fwd_f32(x, eps)
    jax.block_until_ready(out["recons"])
    assert out["recons"].shape == (B, IN)
    assert out["z_mean"].shape == (B, L) and out["z_log_var"].shape == (B, L)
    assert jnp.allclose(out["recons"], r_ref, atol=1e-3, rtol=1e-3)
    assert jnp.allclose(out["z_mean"], zm_ref, atol=1e-3, rtol=1e-3)
    assert jnp.allclose(out["z_log_var"], zv_ref, atol=1e-3, rtol=1e-3)

    # bf16 matmul operands (f32 accumulation + f32 elementwise) with bf16 recons
    # writeback — the fast path on all chips; verified at loose tolerance.
    prepped_bf16 = prepare_vae_params(params, compute_dtype=jnp.bfloat16)
    fwd_bf16 = jax.jit(
        lambda xx, ee: vae_forward(xx, ee, prepped_bf16, out_dtype=jnp.bfloat16))
    out16 = fwd_bf16(x, eps)
    jax.block_until_ready(out16["recons"])
    assert out16["recons"].dtype == jnp.bfloat16
    assert jnp.allclose(out16["recons"].astype(jnp.float32), r_ref, atol=5e-2, rtol=5e-2)
    assert jnp.allclose(out16["z_mean"], zm_ref, atol=5e-2, rtol=5e-2)
    assert jnp.allclose(out16["z_log_var"], zv_ref, atol=5e-2, rtol=5e-2)

    print("KERNEL_OK")
</pallas_src>

<mosaic_0001>
module attributes {stable_mosaic.version = 11 : i64} {
  func.func @vae_kernel(%arg0: i32, %arg1: memref<8x128xf32, #tpu.memory_space<vmem>>, %arg2: memref<8x128xf32, #tpu.memory_space<vmem>>, %arg3: memref<128x128xf32, #tpu.memory_space<vmem>>, %arg4: memref<1x128xf32, #tpu.memory_space<vmem>>, %arg5: memref<128x256xf32, #tpu.memory_space<vmem>>, %arg6: memref<1x256xf32, #tpu.memory_space<vmem>>, %arg7: memref<128x128xf32, #tpu.memory_space<vmem>>, %arg8: memref<1x128xf32, #tpu.memory_space<vmem>>, %arg9: memref<8x128xf32, #tpu.memory_space<vmem>>, %arg10: memref<8x256xf32, #tpu.memory_space<vmem>>) attributes {dimension_semantics = [#tpu.dimension_semantics<parallel>], iteration_bounds = array<i64: 1>, scalar_prefetch = 0 : i64, scratch_operands = 0 : i64, tpu.core_type = #tpu.core_type<tc>, window_params = [{transform_indices = @transform_0, window_bounds = array<i64: 8, 128>}, {transform_indices = @transform_1, window_bounds = array<i64: 8, 128>}, {pipeline_mode = #tpu.pipeline_mode<synchronous>, transform_indices = @transform_2, window_bounds = array<i64: 128, 128>}, {pipeline_mode = #tpu.pipeline_mode<synchronous>, transform_indices = @transform_3, window_bounds = array<i64: 1, 128>}, {pipeline_mode = #tpu.pipeline_mode<synchronous>, transform_indices = @transform_4, window_bounds = array<i64: 128, 256>}, {pipeline_mode = #tpu.pipeline_mode<synchronous>, transform_indices = @transform_5, window_bounds = array<i64: 1, 256>}, {pipeline_mode = #tpu.pipeline_mode<synchronous>, transform_indices = @transform_6, window_bounds = array<i64: 128, 128>}, {pipeline_mode = #tpu.pipeline_mode<synchronous>, transform_indices = @transform_7, window_bounds = array<i64: 1, 128>}, {transform_indices = @transform_8, window_bounds = array<i64: 8, 128>}, {transform_indices = @transform_9, window_bounds = array<i64: 8, 256>}]} {
    %c0 = arith.constant 0 : index
    %c0_0 = arith.constant 0 : index
    %0 = vector.load %arg1[%c0, %c0_0] : memref<8x128xf32, #tpu.memory_space<vmem>>, vector<8x128xf32>
    %c0_1 = arith.constant 0 : index
    %c0_2 = arith.constant 0 : index
    %1 = vector.load %arg3[%c0_1, %c0_2] : memref<128x128xf32, #tpu.memory_space<vmem>>, vector<128x128xf32>
    %cst = arith.constant dense<0.000000e+00> : vector<8x128xf32>
    %2 = tpu.matmul %0, %1, %cst {dimension_numbers = #tpu.dot_dimension_numbers<[1], [0], [0], [1], [0, 0, 1, 1], [], []>} : vector<8x128xf32>, vector<128x128xf32>, vector<8x128xf32> -> vector<8x128xf32>
    %c0_3 = arith.constant 0 : index
    %c0_4 = arith.constant 0 : index
    %3 = vector.load %arg4[%c0_3, %c0_4] : memref<1x128xf32, #tpu.memory_space<vmem>>, vector<1x128xf32>
    %4 = vector.broadcast %3 : vector<1x128xf32> to vector<8x128xf32>
    %5 = arith.addf %2, %4 : vector<8x128xf32>
    %cst_5 = arith.constant 0.000000e+00 : f32
    %6 = vector.broadcast %cst_5 : f32 to vector<8x128xf32>
    %7 = arith.maximumf %5, %6 : vector<8x128xf32>
    %c0_6 = arith.constant 0 : index
    %c0_7 = arith.constant 0 : index
    %8 = vector.load %arg5[%c0_6, %c0_7] : memref<128x256xf32, #tpu.memory_space<vmem>>, vector<128x256xf32>
    %cst_8 = arith.constant dense<0.000000e+00> : vector<8x256xf32>
    %9 = tpu.matmul %7, %8, %cst_8 {dimension_numbers = #tpu.dot_dimension_numbers<[1], [0], [0], [1], [0, 0, 1, 1], [], []>} : vector<8x128xf32>, vector<128x256xf32>, vector<8x256xf32> -> vector<8x256xf32>
    %c0_9 = arith.constant 0 : index
    %c0_10 = arith.constant 0 : index
    %10 = vector.load %arg6[%c0_9, %c0_10] : memref<1x256xf32, #tpu.memory_space<vmem>>, vector<1x256xf32>
    %11 = vector.broadcast %10 : vector<1x256xf32> to vector<8x256xf32>
    %12 = arith.addf %9, %11 : vector<8x256xf32>
    %13 = vector.extract_strided_slice %12 {offsets = [0, 0], sizes = [8, 128], strides = [1, 1]} : vector<8x256xf32> to vector<8x128xf32>
    %14 = vector.extract_strided_slice %12 {offsets = [0, 128], sizes = [8, 128], strides = [1, 1]} : vector<8x256xf32> to vector<8x128xf32>
    %cst_11 = arith.constant 5.000000e-01 : f32
    %15 = vector.broadcast %cst_11 : f32 to vector<8x128xf32>
    %16 = arith.mulf %15, %14 : vector<8x128xf32>
    %17 = math.exp %16 : vector<8x128xf32>
    %c0_12 = arith.constant 0 : index
    %c0_13 = arith.constant 0 : index
    %18 = vector.load %arg2[%c0_12, %c0_13] : memref<8x128xf32, #tpu.memory_space<vmem>>, vector<8x128xf32>
    %19 = arith.mulf %17, %18 : vector<8x128xf32>
    %20 = arith.addf %13, %19 : vector<8x128xf32>
    %c0_14 = arith.constant 0 : index
    %c0_15 = arith.constant 0 : index
    %21 = vector.load %arg7[%c0_14, %c0_15] : memref<128x128xf32, #tpu.memory_space<vmem>>, vector<128x128xf32>
    %cst_16 = arith.constant dense<0.000000e+00> : vector<8x128xf32>
    %22 = tpu.matmul %20, %21, %cst_16 {dimension_numbers = #tpu.dot_dimension_numbers<[1], [0], [0], [1], [0, 0, 1, 1], [], []>} : vector<8x128xf32>, vector<128x128xf32>, vector<8x128xf32> -> vector<8x128xf32>
    %c0_17 = arith.constant 0 : index
    %c0_18 = arith.constant 0 : index
    %23 = vector.load %arg8[%c0_17, %c0_18] : memref<1x128xf32, #tpu.memory_space<vmem>>, vector<1x128xf32>
    %24 = vector.broadcast %23 : vector<1x128xf32> to vector<8x128xf32>
    %25 = arith.addf %22, %24 : vector<8x128xf32>
    %c0_19 = arith.constant 0 : index
    %c0_20 = arith.constant 0 : index
    %26 = vector.load %arg9[%c0_19, %c0_20] : memref<8x128xf32, #tpu.memory_space<vmem>>, vector<8x128xf32>
    tpu.vector_store %arg9[%c0_19, %c0_20], %25 {strides = array<i32>} : memref<8x128xf32, #tpu.memory_space<vmem>>, vector<8x128xf32>,
    %c0_21 = arith.constant 0 : index
    %c0_22 = arith.constant 0 : index
    %27 = vector.load %arg10[%c0_21, %c0_22] : memref<8x256xf32, #tpu.memory_space<vmem>>, vector<8x256xf32>
    tpu.vector_store %arg10[%c0_21, %c0_22], %12 {strides = array<i32>} : memref<8x256xf32, #tpu.memory_space<vmem>>, vector<8x256xf32>,
    return
  }
  func.func @transform_0(%arg0: i32) -> (i32, i32) {
    %c0_i32 = arith.constant 0 : i32
    %c0_i32_0 = arith.constant 0 : i32
    return %arg0, %c0_i32 : i32, i32
  }
  func.func @transform_1(%arg0: i32) -> (i32, i32) {
    %c0_i32 = arith.constant 0 : i32
    %c0_i32_0 = arith.constant 0 : i32
    return %arg0, %c0_i32 : i32, i32
  }
  func.func @transform_2(%arg0: i32) -> (i32, i32) {
    %c0_i32 = arith.constant 0 : i32
    %c0_i32_0 = arith.constant 0 : i32
    %c0_i32_1 = arith.constant 0 : i32
    return %c0_i32, %c0_i32_0 : i32, i32
  }
  func.func @transform_3(%arg0: i32) -> (i32, i32) {
    %c0_i32 = arith.constant 0 : i32
    %c0_i32_0 = arith.constant 0 : i32
    %c0_i32_1 = arith.constant 0 : i32
    return %c0_i32, %c0_i32_0 : i32, i32
  }
  func.func @transform_4(%arg0: i32) -> (i32, i32) {
    %c0_i32 = arith.constant 0 : i32
    %c0_i32_0 = arith.constant 0 : i32
    %c0_i32_1 = arith.constant 0 : i32
    return %c0_i32, %c0_i32_0 : i32, i32
  }
  func.func @transform_5(%arg0: i32) -> (i32, i32) {
    %c0_i32 = arith.constant 0 : i32
    %c0_i32_0 = arith.constant 0 : i32
    %c0_i32_1 = arith.constant 0 : i32
    return %c0_i32, %c0_i32_0 : i32, i32
  }
  func.func @transform_6(%arg0: i32) -> (i32, i32) {
    %c0_i32 = arith.constant 0 : i32
    %c0_i32_0 = arith.constant 0 : i32
    %c0_i32_1 = arith.constant 0 : i32
    return %c0_i32, %c0_i32_0 : i32, i32
  }
  func.func @transform_7(%arg0: i32) -> (i32, i32) {
    %c0_i32 = arith.constant 0 : i32
    %c0_i32_0 = arith.constant 0 : i32
    %c0_i32_1 = arith.constant 0 : i32
    return %c0_i32, %c0_i32_0 : i32, i32
  }
  func.func @transform_8(%arg0: i32) -> (i32, i32) {
    %c0_i32 = arith.constant 0 : i32
    %c0_i32_0 = arith.constant 0 : i32
    return %arg0, %c0_i32 : i32, i32
  }
  func.func @transform_9(%arg0: i32) -> (i32, i32) {
    %c0_i32 = arith.constant 0 : i32
    %c0_i32_0 = arith.constant 0 : i32
    return %arg0, %c0_i32 : i32, i32
  }
}

</mosaic_0001>

<bundles_post_ra>
// kernel: _lambda_.1
= control target key start
LH: loop header
LB: loop body
LE: loop exit
PB: predicated region body
PF: predicated region fallthrough
CT: control target
= control target key end

     0   :  { %15 = vsyncpa [#allocation3], 0  ;;  %s739_s0 = inlined_call_operand.vmem [shape: f32[8,128], index: 0, kind: input, shape index: {}]   ;;  %s740_s1 = inlined_call_operand.vmem [shape: f32[8,128], index: 1, kind: input, shape index: {}]   ;;  %s741_s2 = inlined_call_operand.hbm [shape: f32[128,128], index: 2, kind: input, shape index: {}]   ;;  %s742_s3 = inlined_call_operand.vmem [shape: f32[1,128], index: 3, kind: input, shape index: {}]   ;;  %s743_s4 = inlined_call_operand.hbm [shape: f32[128,256], index: 4, kind: input, shape index: {}]   ;;  %s744_s5 = inlined_call_operand.vmem [shape: f32[1,256], index: 5, kind: input, shape index: {}]   ;;  %s745_s6 = inlined_call_operand.hbm [shape: f32[128,128], index: 6, kind: input, shape index: {}]   ;;  %s746_s7 = inlined_call_operand.vmem [shape: f32[1,128], index: 7, kind: input, shape index: {}]   ;;  %s747_s8 = inlined_call_operand.hbm [shape: f32[8,128], index: 8, kind: output, shape index: {0}]   ;;  %s748_s9 = inlined_call_operand.vmem [shape: f32[8,256], index: 9, kind: output, shape index: {1}]  }
   0x1   :  { %16 = vsyncpa [#allocation6], 0 }
   0x2   :  { %17 = vsyncpa [#allocation4], 0  ;;  %s609_s30 = smov [#allocation5]  }
   0x3   :  { %s41_s10 = sshll.u32 %s609_s30, 4  ;;  %s42_s10 = int_to_ptr.vmem [resolvable:$true] %s41_s10 }
   0x4   :  { %s531_s11 = scalar_lea.vmem %s42_s10, 4096  ;;  %p536_p1 = scmp.lt.s32.totalorder %s42_s10, %s42_s10 }
   0x5   :  { %p532_p0 = scmp.ne.s32.totalorder %s42_s10, %s531_s11  ;;  %p537_p2 = scmp.lt.s32.totalorder %s531_s11, %s531_s11 }
   0x7   :  { %p538_p3 = por %p537_p2, %p536_p1 }
   0x9   :  { %p539_p4 = pnand %p538_p3, %p532_p0 }
   0xb   :  { %542 = shalt.err (!%p539_p4)
}
   0xc   :  { %s610_s12 = smov 256   ;;  %s611_s13 = smov 16  }
   0xd   :  { %47 = dma.hbm_to_vmem [thread:$0]  %s743_s4, 4096, %s42_s10, [#allocation6], %s610_s12, %s610_s12, %s611_s13  }
   0xe   :  { %s612_s16 = smov [#allocation2]  }
   0xf   :  { %s27_s17 = sshll.u32 %s612_s16, 4  ;;  %s28_s17 = int_to_ptr.vmem [resolvable:$true] %s27_s17 }
  0x10   :  { %s551_s18 = scalar_lea.vmem %s28_s17, 2048  ;;  %p556_p6 = scmp.lt.s32.totalorder %s28_s17, %s28_s17 }
  0x11   :  { %p552_p5 = scmp.ne.s32.totalorder %s28_s17, %s551_s18  ;;  %p557_p7 = scmp.lt.s32.totalorder %s551_s18, %s551_s18 }
  0x13   :  { %p558_p8 = por %p557_p7, %p556_p6 }
  0x15   :  { %p559_p9 = pnand %p558_p8, %p552_p5 }
  0x17   :  { %562 = shalt.err (!%p559_p9)
}
  0x18   :  { %s613_s19 = smov 128   ;;  %s614_s20 = smov 8  }
  0x19   :  { %33 = dma.hbm_to_vmem [thread:$0]  %s741_s2, 2048, %s28_s17, [#allocation3], %s613_s19, %s613_s19, %s614_s20  }
  0x1a   :  { %s615_s23 = smov [#allocation7]  }
  0x1b   :  { %s55_s24 = sshll.u32 %s615_s23, 4  ;;  %s56_s24 = int_to_ptr.vmem [resolvable:$true] %s55_s24 }
  0x1c   :  { %s571_s4 = scalar_lea.vmem %s56_s24, 2048  ;;  %p576_p11 = scmp.lt.s32.totalorder %s56_s24, %s56_s24 }
  0x1d   :  { %p572_p10 = scmp.ne.s32.totalorder %s56_s24, %s571_s4  ;;  %p577_p12 = scmp.lt.s32.totalorder %s571_s4, %s571_s4 }
  0x1f   :  { %p578_p13 = por %p577_p12, %p576_p11 }
  0x21   :  { %p579_p0 = pnand %p578_p13, %p572_p10 }
  0x23   :  { %582 = shalt.err (!%p579_p0)
}
  0x24   :  { %61 = dma.hbm_to_vmem [thread:$0]  %s745_s6, 2048, %s56_s24, [#allocation6], %s613_s19, %s613_s19, %s614_s20  }
  0x25   :  { %603 = dma.done.wait [#allocation3], 2048  }
  0x26   :  { %604 = vsyncadd [#allocation3], 4294965248 }
  0x27   :  { %605 = dma.done.wait [#allocation6], 6144  }
  0x28   :  { %606 = vsyncadd [#allocation6], 4294961152  ;;  %v616_v0 = vmov 0.0   ;;  %vm617_vm0 = vmmov 0   ;;  %v89_v1 = vld [vmem:[#allocation2 + $0x78] sm:$0xff]  ;;  %v88_v2 = vld [vmem:[#allocation2 + $0x70] sm:$0xff] }
  0x29   :  { %441 = vmatprep.subr.mxu0 %v616_v0  ;;  %473 = vmatprep.mubr.msk.f32.mxu0 %vm617_vm0, %v616_v0  ;;  %v87_v3 = vld [vmem:[#allocation2 + $0x68] sm:$0xff]  ;;  %v86_v4 = vld [vmem:[#allocation2 + $0x60] sm:$0xff]  ;;  %v85_v5 = vld [vmem:[#allocation2 + $0x58] sm:$0xff]  ;;  %s618_s15 = smov [#allocation8]  }
  0x2a   :  { %276 = vmatprep.mubr.f32.mxu1 %v616_v0  ;;  %442 = vmatpush3.msra.mxu0 %v89_v1  ;;  %v199_v6 = vld [vmem:[#allocation5 + $0xf8] sm:$0xff]  ;;  %v198_v7 = vld [vmem:[#allocation5 + $0xf0] sm:$0xff]  ;;  %v197_v8 = vld [vmem:[#allocation5 + $0xe8] sm:$0xff]  ;;  %s391_s16 = sshll.u32 %s618_s15, 4  ;;  %s392_s16 = int_to_ptr.vmem [resolvable:$true] %s391_s16 }
  0x2b   :  { %443 = vmatprep.subr.mxu0 %v616_v0  ;;  %212 = vmatprep.subr.mxu1 %v199_v6  ;;  %v196_v9 = vld [vmem:[#allocation5 + $0xe0] sm:$0xff]  ;;  %v195_v10 = vld [vmem:[#allocation5 + $0xd8] sm:$0xff]  ;;  %v84_v11 = vld [vmem:[#allocation2 + $0x50] sm:$0xff]  ;;  %p588_p2 = scmp.lt.s32.totalorder %s392_s16, %s392_s16 }
  0x2c   :  { %444 = vmatpush3.msra.mxu0 %v88_v2  ;;  %213 = vmatpush1.msra.mxu1 %v198_v7  ;;  %v194_v12 = vld [vmem:[#allocation5 + $0xd0] sm:$0xff]  ;;  %v193_v13 = vld [vmem:[#allocation5 + $0xc8] sm:$0xff]  ;;  %v192_v15 = vld [vmem:[#allocation5 + $0xc0] sm:$0xff] }
  0x2d   :  { %445 = vmatprep.subr.mxu0 %v616_v0  ;;  %214 = vmatprep.subr.mxu1 %v197_v8  ;;  %v83_v14 = vld [vmem:[#allocation2 + $0x48] sm:$0xff]  ;;  %v191_v16 = vld [vmem:[#allocation5 + $0xb8] sm:$0xff]  ;;  %v82_v17 = vld [vmem:[#allocation2 + $0x40] sm:$0xff]  ;;  %v202_v8 = vlaneseq }
  0x2e   :  { %446 = vmatpush3.msra.mxu0 %v87_v3  ;;  %215 = vmatpush1.msra.mxu1 %v196_v9  ;;  %v190_v18 = vld [vmem:[#allocation5 + $0xb0] sm:$0xff]  ;;  %v189_v19 = vld [vmem:[#allocation5 + $0xa8] sm:$0xff]  ;;  %v81_v20 = vld [vmem:[#allocation2 + $0x38] sm:$0xff] }
  0x2f   :  { %447 = vmatprep.subr.mxu0 %v616_v0  ;;  %216 = vmatprep.subr.mxu1 %v195_v10  ;;  %v188_v21 = vld [vmem:[#allocation5 + $0xa0] sm:$0xff]  ;;  %v187_v22 = vld [vmem:[#allocation5 + $0x98] sm:$0xff]  ;;  %v80_v23 = vld [vmem:[#allocation2 + $0x30] sm:$0xff]  ;;  %v203_v9 = vshrl.u32 %v202_v8, 7 }
  0x30   :  { %448 = vmatpush3.msra.mxu0 %v86_v4  ;;  %217 = vmatpush1.msra.mxu1 %v194_v12  ;;  %v186_v24 = vld [vmem:[#allocation5 + $0x90] sm:$0xff]  ;;  %v185_v25 = vld [vmem:[#allocation5 + $0x88] sm:$0xff]  ;;  %v184_v27 = vld [vmem:[#allocation5 + $0x80] sm:$0xff] }
  0x31   :  { %449 = vmatprep.subr.mxu0 %v616_v0  ;;  %218 = vmatprep.subr.mxu1 %v193_v13  ;;  %v79_v26 = vld [vmem:[#allocation2 + $0x28] sm:$0xff]  ;;  %v183_v28 = vld [vmem:[#allocation5 + $0x78] sm:$0xff]  ;;  %v78_v29 = vld [vmem:[#allocation2 + $0x20] sm:$0xff]  ;;  %v204_v10 = vsub.s32 0, %v203_v9  ;;  %v208_v12 = vsub.s32 1, %v203_v9 }
  0x32   :  { %450 = vmatpush3.msra.mxu0 %v85_v5  ;;  %219 = vmatpush1.msra.mxu1 %v192_v15  ;;  %v182_v30 = vld [vmem:[#allocation5 + $0x70] sm:$0xff]  ;;  %v181_v31 = vld [vmem:[#allocation5 + $0x68] sm:$0xff]  ;;  %v77_v32 = vld [vmem:[#allocation2 + $0x18] sm:$0xff] }
  0x33   :  { %451 = vmatprep.subr.mxu0 %v616_v0  ;;  %220 = vmatprep.subr.mxu1 %v191_v16  ;;  %v180_v33 = vld [vmem:[#allocation5 + $0x60] sm:$0xff]  ;;  %v179_v34 = vld [vmem:[#allocation5 + $0x58] sm:$0xff]  ;;  %v76_v35 = vld [vmem:[#allocation2 + $0x10] sm:$0xff] }
  0x34   :  { %452 = vmatpush3.msra.mxu0 %v84_v11  ;;  %221 = vmatpush1.msra.mxu1 %v190_v18  ;;  %v178_v36 = vld [vmem:[#allocation5 + $0x50] sm:$0xff]  ;;  %v177_v37 = vld [vmem:[#allocation5 + $0x48] sm:$0xff]  ;;  %v176_v39 = vld [vmem:[#allocation5 + $0x40] sm:$0xff] }
  0x35   :  { %453 = vmatprep.subr.mxu0 %v616_v0  ;;  %222 = vmatprep.subr.mxu1 %v189_v19  ;;  %v75_v38 = vld [vmem:[#allocation2 + $0x8] sm:$0xff]  ;;  %v175_v40 = vld [vmem:[#allocation5 + $0x38] sm:$0xff]  ;;  %v74_v41 = vld [vmem:[#allocation2] sm:$0xff] }
  0x36   :  { %454 = vmatpush3.msra.mxu0 %v83_v14  ;;  %223 = vmatpush1.msra.mxu1 %v188_v21  ;;  %v174_v42 = vld [vmem:[#allocation5 + $0x30] sm:$0xff]  ;;  %v73_v43 = vld [vmem:[%s739_s0] sm:$0xff]  ;;  %v173_v44 = vld [vmem:[#allocation5 + $0x28] sm:$0xff] }
  0x37   :  { %455 = vmatprep.subr.mxu0 %v616_v0  ;;  %224 = vmatprep.subr.mxu1 %v187_v22  ;;  %v172_v45 = vld [vmem:[#allocation5 + $0x20] sm:$0xff]  ;;  %v171_v46 = vld [vmem:[#allocation5 + $0x18] sm:$0xff]  ;;  %v170_v47 = vld [vmem:[#allocation5 + $0x10] sm:$0xff] }
  0x38   :  { %456 = vmatpush3.msra.mxu0 %v82_v17  ;;  %225 = vmatpush1.msra.mxu1 %v186_v24  ;;  %v169_v48 = vld [vmem:[#allocation5 + $0x8] sm:$0xff]  ;;  %v168_v49 = vld [vmem:[#allocation5] sm:$0xff]  ;;  %v304_v50 = vld [vmem:[#allocation7 + $0x78] sm:$0xff] }
  0x39   :  { %457 = vmatprep.subr.mxu0 %v616_v0  ;;  %226 = vmatprep.subr.mxu1 %v185_v25  ;;  %v303_v51 = vld [vmem:[#allocation7 + $0x70] sm:$0xff]  ;;  %v405_v52 = vld [vmem:[%s742_s3] ss:$0 sm:$0xff]  ;;  %v302_v57 = vld [vmem:[#allocation7 + $0x68] sm:$0xff] }
  0x3a   :  { %458 = vmatpush3.msra.mxu0 %v81_v20  ;;  %227 = vmatpush1.msra.mxu1 %v184_v27  ;;  %v301_v58 = vld [vmem:[#allocation7 + $0x60] sm:$0xff]  ;;  %v300_v59 = vld [vmem:[#allocation7 + $0x58] sm:$0xff]  ;;  %v299_v60 = vld [vmem:[#allocation7 + $0x50] sm:$0xff] }
  0x3b   :  { %459 = vmatprep.subr.mxu0 %v616_v0  ;;  %228 = vmatprep.subr.mxu1 %v183_v28  ;;  %v298_v61 = vld [vmem:[#allocation7 + $0x48] sm:$0xff]  ;;  %v297_v62 = vld [vmem:[#allocation7 + $0x40] sm:$0xff]  ;;  %v296_v63 = vld [vmem:[#allocation7 + $0x38] sm:$0xff] }
  0x3c   :  { %460 = vmatpush3.msra.mxu0 %v80_v23  ;;  %229 = vmatpush1.msra.mxu1 %v182_v30  ;;  %v295_v1 = vld [vmem:[#allocation7 + $0x30] sm:$0xff]  ;;  %v294_v2 = vld [vmem:[#allocation7 + $0x28] sm:$0xff]  ;;  %v293_v3 = vld [vmem:[#allocation7 + $0x20] sm:$0xff] }
  0x3d   :  { %461 = vmatprep.subr.mxu0 %v616_v0  ;;  %230 = vmatprep.subr.mxu1 %v181_v31  ;;  %v292_v4 = vld [vmem:[#allocation7 + $0x18] sm:$0xff]  ;;  %v291_v5 = vld [vmem:[#allocation7 + $0x10] sm:$0xff]  ;;  %v290_v6 = vld [vmem:[#allocation7 + $0x8] sm:$0xff] }
  0x3e   :  { %462 = vmatpush3.msra.mxu0 %v79_v26  ;;  %231 = vmatpush1.msra.mxu1 %v180_v33  ;;  %v289_v7 = vld [vmem:[#allocation7] sm:$0xff] }
  0x3f   :  { %463 = vmatprep.subr.mxu0 %v616_v0  ;;  %232 = vmatprep.subr.mxu1 %v179_v34  ;;  %v200_v11 = vld [vmem:[%s744_s5] sm:$0x3] }
  0x40   :  { %464 = vmatpush3.msra.mxu0 %v78_v29  ;;  %233 = vmatpush1.msra.mxu1 %v178_v36  ;;  %v205_v13 = vrot.slane %v200_v11, %v204_v10  ;;  %v209_v14 = vrot.slane %v200_v11, %v208_v12  ;;  %v286_v20 = vld [vmem:[%s740_s1] sm:$0xff] }
  0x41   :  { %465 = vmatprep.subr.mxu0 %v616_v0  ;;  %234 = vmatprep.subr.mxu1 %v177_v37  ;;  %v406_v24 = vld [vmem:[%s746_s7] ss:$0 sm:$0xff] }
  0x42   :  { %466 = vmatpush3.msra.mxu0 %v77_v32  ;;  %235 = vmatpush1.msra.mxu1 %v176_v39 }
  0x43   :  { %467 = vmatprep.subr.mxu0 %v616_v0  ;;  %236 = vmatprep.subr.mxu1 %v175_v40 }
  0x44   :  { %468 = vmatpush3.msra.mxu0 %v76_v35  ;;  %237 = vmatpush1.msra.mxu1 %v174_v42 }
  0x45   :  { %469 = vmatprep.subr.mxu0 %v616_v0  ;;  %238 = vmatprep.subr.mxu1 %v173_v44 }
  0x46   :  { %470 = vmatpush3.msra.mxu0 %v75_v38  ;;  %239 = vmatpush1.msra.mxu1 %v172_v45 }
  0x47   :  { %471 = vmatprep.subr.mxu0 %v616_v0  ;;  %240 = vmatprep.subr.mxu1 %v171_v46 }
  0x48   :  { %472 = vmatpush3.msra.mxu0 %v74_v41  ;;  %241 = vmatpush1.msra.mxu1 %v170_v47 }
  0x49   :  { %474 = vmatmul.mubr.f32.vlgmr.msra.gmra.mxu0 %v73_v43  ;;  %476 = vmatprep.subr.mxu0 %v616_v0 }
  0x4a   :  { %508 = vmatprep.mubr.msk.f32.mxu0 %vm617_vm0, %v616_v0  ;;  %242 = vmatprep.subr.mxu1 %v169_v48 }
  0x4b   :  { %243 = vmatpush1.msra.mxu1 %v168_v49  ;;  %477 = vmatpush3.msra.mxu0 %v304_v50 }
  0x4c   :  { %478 = vmatprep.subr.mxu0 %v616_v0 }
  0x4d   :  { %479 = vmatpush3.msra.mxu0 %v303_v51 }
  0x4e   :  { %480 = vmatprep.subr.mxu0 %v616_v0 }
  0x4f   :  { %481 = vmatpush3.msra.mxu0 %v302_v57 }
  0x50   :  { %482 = vmatprep.subr.mxu0 %v616_v0 }
  0x51   :  { %483 = vmatpush3.msra.mxu0 %v301_v58 }
  0x52   :  { %484 = vmatprep.subr.mxu0 %v616_v0 }
  0x53   :  { %485 = vmatpush3.msra.mxu0 %v300_v59 }
  0x54   :  { %486 = vmatprep.subr.mxu0 %v616_v0 }
  0x55   :  { %487 = vmatpush3.msra.mxu0 %v299_v60 }
  0x56   :  { %488 = vmatprep.subr.mxu0 %v616_v0 }
  0x57   :  { %489 = vmatpush3.msra.mxu0 %v298_v61 }
  0x58   :  { %490 = vmatprep.subr.mxu0 %v616_v0 }
  0x59   :  { %491 = vmatpush3.msra.mxu0 %v297_v62 }
  0x5a   :  { %492 = vmatprep.subr.mxu0 %v616_v0 }
  0x5b   :  { %493 = vmatpush3.msra.mxu0 %v296_v63 }
  0x5c   :  { %494 = vmatprep.subr.mxu0 %v616_v0 }
  0x5d   :  { %495 = vmatpush3.msra.mxu0 %v295_v1 }
  0x5e   :  { %496 = vmatprep.subr.mxu0 %v616_v0 }
  0x5f   :  { %497 = vmatpush3.msra.mxu0 %v294_v2 }
  0x60   :  { %498 = vmatprep.subr.mxu0 %v616_v0 }
  0x61   :  { %499 = vmatpush3.msra.mxu0 %v293_v3 }
  0x62   :  { %500 = vmatprep.subr.mxu0 %v616_v0 }
  0x63   :  { %501 = vmatpush3.msra.mxu0 %v292_v4 }
  0x64   :  { %502 = vmatprep.subr.mxu0 %v616_v0 }
  0x65   :  { %503 = vmatpush3.msra.mxu0 %v291_v5 }
  0x66   :  { %504 = vmatprep.subr.mxu0 %v616_v0 }
  0x67   :  { %505 = vmatpush3.msra.mxu0 %v290_v6 }
  0x68   :  { %506 = vmatprep.subr.mxu0 %v616_v0 }
  0x69   :  { %507 = vmatpush3.msra.mxu0 %v289_v7 }
 0x109   :  { %v163_v53 = vpop.f32.mrf.mxu0 }
 0x10a   :  { %v164_v54 = vadd.f32 %v405_v52, %v163_v53 }
 0x10b   :  { %v475_v55 = vpop.f32.mrf.mxu0 }
 0x10c   :  { %v167_v56 = vmax.f32 %v164_v54, 0.0 }
 0x10e   :  { %277 = vmatmul.mubr.f32.vlgmr.msra.gmra.mxu1 %v167_v56 }
 0x1ce   :  { %v278_v15 = vpop.f32.mrf.mxu1 }
 0x1cf   :  { %v279_v16 = vadd.f32 %v278_v15, %v205_v13 }
 0x1d0   :  { %v280_v17 = vpop.f32.mrf.mxu1 }
 0x1d1   :  { %383 = vst [vmem:[%s748_s9] sm:$0xff] %v279_v16  ;;  %v281_v18 = vadd.f32 %v280_v17, %v209_v14 }
 0x1d3   :  { %v283_v0 = vmul.f32 0.5, %v281_v18  ;;  %384 = vst [vmem:[%s748_s9 + $0x8] sm:$0xff] %v281_v18  ;;  %s583_s9 = scalar_lea.vmem %s392_s16, 128 }
 0x1d4   :  { %p584_p1 = scmp.ne.s32.totalorder %s392_s16, %s583_s9  ;;  %p589_p3 = scmp.lt.s32.totalorder %s583_s9, %s583_s9 }
 0x1d5   :  { %v284_v19 = vmul.f32 1.442695, %v283_v0 }
 0x1d6   :  { %p590_p4 = por %p589_p3, %p588_p2 }
 0x1d7   :  { %521 = vpow2.f32 %v284_v19 }
 0x1d8   :  { %p591_p5 = pnand %p590_p4, %p584_p1 }
 0x1e4   :  { %v522_v21 = vpop.eup %521 }
 0x1e5   :  { %v287_v22 = vmul.f32 %v522_v21, %v286_v20 }
 0x1e7   :  { %v288_v23 = vadd.f32 %v287_v22, %v279_v16 }
 0x1e9   :  { %509 = vmatmul.mubr.f32.vlgmr.msra.gmra.mxu0 %v288_v23 }
 0x2a9   :  { %v378_v25 = vpop.f32.mrf.mxu0 }
 0x2aa   :  { %v379_v26 = vadd.f32 %v406_v24, %v378_v25 }
 0x2ab   :  { %v510_v27 = vpop.f32.mrf.mxu0 }
 0x2ac   :  { %382 = vst [vmem:[#allocation8] sm:$0xff] %v379_v26 }
 0x2ad   :  { %594 = shalt.err (!%p591_p5)
}
 0x2ae   :  { %394 = dma.vmem_to_hbm [thread:$0]  %s392_s16, 128, %s747_s8, [#allocation4]  }
 0x2af   :  { %607 = dma.done.wait [#allocation4], 128  }
 0x2b0   :  { %608 = vsyncadd [#allocation4], 4294967168 }
 0x2b1   :  { %402 = vsyncpa [#allocation3], 1 }
 0x2b2   :  { %403 = vsyncpa [#allocation6], 1 }
 0x2b3   :  { %404 = vsyncpa [#allocation4], 1 }

</bundles_post_ra>
